<compile_context>
chip_gen: v7x
topology: tpu7x:2x2x1
jax: 0.10.0
libtpu: 0.0.40
codegen_flags: <defaults>
</compile_context>

<pallas_src>
import jax
import jax.numpy as jnp
from jax.experimental import pallas as pl
from jax.experimental.pallas import tpu as pltpu

EMBED_DIM = 512  # fixed by the module: nn.Linear(512, 1)


def _round_up(x, m):
    return (x + m - 1) // m * m


def _default_compute_dtype():
    # bf16 VPU/EUP exists on v6e/v7x; keep f32 elsewhere (v5e has no bf16 VPU/EUP).
    kind = jax.devices()[0].device_kind.lower()
    if "v6" in kind or "v7" in kind or "7x" in kind:
        return jnp.bfloat16
    return jnp.float32


def _semantic_decoupling_kernel(p_ref, e_ref, w_ref, b_ref, o_ref):
    # p_ref: (1, Np, D) VMEM   e_ref: (Cb, D) VMEM   w_ref: (1, D) VMEM
    # b_ref: (1,)       SMEM   o_ref: (1, Cb, D) VMEM
    p = p_ref[0]                               # (Np, D)  compute dtype
    e = e_ref[...]                             # (Cb, D)  compute dtype
    cb, d = e.shape
    n = p.shape[0]
    bias = b_ref[0]                            # scalar f32 (SMEM)

    # Class-blocked interaction + tanh on VPU/EUP.  This is the only
    # (Cb, Np, D)-sized temporary in the kernel.
    inter = jnp.tanh(p[None, :, :] * e[:, None, :])                        # (Cb, Np, D)

    # fc(D -> 1) as an MXU matvec with f32 accumulation: no (Cb,Np,D) product
    # temp, no f32-cast temp, no XLU lane reduce over D.
    score = jnp.dot(inter.reshape(cb * n, d),
                    jnp.reshape(w_ref[...], (d, 1)),
                    preferred_element_type=jnp.float32).reshape(cb, n) + bias
    wgt = jax.nn.sigmoid(score)                                            # (Cb, Np) f32

    # Weighted patch sum as a real MXU matmul: (Cb, Np) @ (Np, D) -> (Cb, D), f32 acc.
    feat = jnp.dot(wgt.astype(p.dtype), p, preferred_element_type=jnp.float32)
    o_ref[0] = feat.astype(o_ref.dtype)


def transformer_semantic_decoupling(patch_embeddings, class_embeddings, fc_w, fc_b,
                                     *, class_block=None, compute_dtype=None):
    """patch_embeddings: (B, N, D); class_embeddings: (C, D);
    fc_w: (1, D) (PyTorch nn.Linear(512, 1).weight layout); fc_b: (1,).
    Returns (B, C, D) in patch_embeddings.dtype."""
    B, N, D = patch_embeddings.shape
    C, Dc = class_embeddings.shape
    assert D == Dc == EMBED_DIM
    assert fc_w.shape == (1, D) and fc_b.shape == (1,)

    out_dtype = patch_embeddings.dtype
    if compute_dtype is None:
        compute_dtype = _default_compute_dtype()
    itemsize = jnp.dtype(compute_dtype).itemsize

    # Pre-cast once on the host (halves DMA for bf16; removes in-kernel re-casts)
    # and zero-pad N to a sublane-dense multiple.  Zero patch rows are exact
    # zeros, so their sigmoid(bias) weights multiply zero and contribute nothing.
    n_mult = 16 if itemsize == 2 else 8
    n_pad = _round_up(N, n_mult)
    patch_c = patch_embeddings.astype(compute_dtype)
    if n_pad != N:
        patch_c = jnp.pad(patch_c, ((0, 0), (0, n_pad - N), (0, 0)))
    cls_c = class_embeddings.astype(compute_dtype)
    w_c = fc_w.astype(compute_dtype)
    b_f32 = fc_b.astype(jnp.float32)

    # Class-block size: multiple of 8, sized so the (Cb, Np, D) tanh temporary
    # stays ~6 MiB (safe inside every generation's default scoped VMEM limit
    # alongside double-buffered I/O), capped at 64.
    if class_block is None:
        budget = 6 * 1024 * 1024
        cb = budget // (n_pad * D * itemsize)
        cb = max(8, min(64, cb // 8 * 8))
    else:
        cb = max(8, _round_up(class_block, 8))
    cb = min(cb, _round_up(C, 8))
    if B == 1 and C > 8:
        # Guarantee >= 2 grid steps so v7x megacore sharding engages.
        cb = min(cb, max(8, _round_up((C + 1) // 2, 8)))
    c_pad = _round_up(C, cb)
    if c_pad != C:
        # Padded class rows produce garbage (sliced off below) -> wasted compute only.
        cls_c = jnp.pad(cls_c, ((0, c_pad - C), (0, 0)))

    out = pl.pallas_call(
        _semantic_decoupling_kernel,
        out_shape=jax.ShapeDtypeStruct((B, c_pad, D), out_dtype),
        grid_spec=pltpu.PrefetchScalarGridSpec(
            num_scalar_prefetch=0,
            grid=(B, c_pad // cb),
            in_specs=[
                # One batch row of (padded) patches; index constant over the
                # inner class axis so it stays resident across class blocks.
                pl.BlockSpec((1, n_pad, D), lambda b, c: (b, 0, 0)),
                # Current class block.
                pl.BlockSpec((cb, D), lambda b, c: (c, 0)),
                # fc weight row (grid-invariant, tiny, lane-dense).
                pl.BlockSpec((1, D), lambda b, c: (0, 0)),
                # fc bias scalar in SMEM.
                pl.BlockSpec(memory_space=pltpu.MemorySpace.SMEM),
            ],
            out_specs=pl.BlockSpec((1, cb, D), lambda b, c: (b, c, 0)),
        ),
        compiler_params=pltpu.CompilerParams(
            dimension_semantics=("parallel", "parallel")),
    )(patch_c, cls_c, w_c, b_f32)

    return out[:, :C, :]


def reference(patch, cls_emb, fc_w, fc_b):
    # Pure-JAX mirror of the PyTorch forward (high-precision contraction).
    inter = jnp.tanh(patch[:, None, :, :] * cls_emb[None, :, None, :])        # (B, C, N, D)
    score = jnp.einsum("bcnd,od->bcno", inter, fc_w, precision="highest") + fc_b
    wgt = jax.nn.sigmoid(score)                                               # (B, C, N, 1)
    return jnp.sum(wgt * patch[:, None, :, :], axis=2)                        # (B, C, D)


if __name__ == "__main__":
    B, N, C, D = 2, 8, 4, EMBED_DIM  # batch=2, patches=8, classes=4, embed=512

    key = jax.random.PRNGKey(0)
    k_patch, k_cls, k_w, k_b = jax.random.split(key, 4)

    patch_embeddings = jax.random.normal(k_patch, (B, N, D), jnp.float32)
    class_embeddings = jax.random.normal(k_cls, (C, D), jnp.float32)
    # fc parameters with nn.Linear(512, 1) shapes: weight (1, 512), bias (1,).
    fc_w = jax.random.normal(k_w, (1, D), jnp.float32) * 0.02
    fc_b = jax.random.normal(k_b, (1,), jnp.float32) * 0.1

    compute_dtype = _default_compute_dtype()
    out = transformer_semantic_decoupling(patch_embeddings, class_embeddings,
                                          fc_w, fc_b, compute_dtype=compute_dtype)
    out = jax.block_until_ready(out)

    ref = reference(patch_embeddings, class_embeddings, fc_w, fc_b)
    assert out.shape == (B, C, D)
    # f32 margin covers MXU pass decomposition; bf16 margin covers bf16 tanh/products.
    tol = 5e-3 if compute_dtype == jnp.float32 else 1e-1
    assert jnp.allclose(out, ref, atol=tol, rtol=tol), "mismatch vs pure-JAX reference"

    print("KERNEL_OK")
</pallas_src>

<mosaic_0001>
module attributes {stable_mosaic.version = 11 : i64} {
  func.func @_semantic_decoupling_kernel(%arg0: i32, %arg1: i32, %arg2: memref<1x8x512xf32, #tpu.memory_space<vmem>>, %arg3: memref<8x512xf32, #tpu.memory_space<vmem>>, %arg4: memref<1x512xf32, #tpu.memory_space<vmem>>, %arg5: memref<1xf32, #tpu.memory_space<smem>>, %arg6: memref<1x8x512xf32, #tpu.memory_space<vmem>>) attributes {dimension_semantics = [#tpu.dimension_semantics<parallel>, #tpu.dimension_semantics<parallel>], iteration_bounds = array<i64: 2, 1>, scalar_prefetch = 0 : i64, scratch_operands = 0 : i64, tpu.core_type = #tpu.core_type<tc>, window_params = [{transform_indices = @transform_0, window_bounds = array<i64: 1, 8, 512>}, {transform_indices = @transform_1, window_bounds = array<i64: 8, 512>}, {pipeline_mode = #tpu.pipeline_mode<synchronous>, transform_indices = @transform_2, window_bounds = array<i64: 1, 512>}, {transform_indices = @transform_3, window_bounds = array<i64: 1>}, {transform_indices = @transform_4, window_bounds = array<i64: 1, 8, 512>}]} {
    %c0 = arith.constant 0 : index
    %c0_0 = arith.constant 0 : index
    %c0_1 = arith.constant 0 : index
    %0 = vector.load %arg2[%c0, %c0_0, %c0_1] : memref<1x8x512xf32, #tpu.memory_space<vmem>>, vector<1x8x512xf32>
    %1 = vector.shape_cast %0 : vector<1x8x512xf32> to vector<8x512xf32>
    %c0_2 = arith.constant 0 : index
    %c0_3 = arith.constant 0 : index
    %2 = vector.load %arg3[%c0_2, %c0_3] : memref<8x512xf32, #tpu.memory_space<vmem>>, vector<8x512xf32>
    %c0_4 = arith.constant 0 : index
    %3 = memref.load %arg5[%c0_4] : memref<1xf32, #tpu.memory_space<smem>>
    %4 = vector.shape_cast %1 : vector<8x512xf32> to vector<1x8x512xf32>
    %5 = vector.shape_cast %2 : vector<8x512xf32> to vector<8x1x512xf32>
    %6 = vector.broadcast %4 : vector<1x8x512xf32> to vector<8x8x512xf32>
    %7 = vector.broadcast %5 : vector<8x1x512xf32> to vector<8x8x512xf32>
    %8 = arith.mulf %6, %7 : vector<8x8x512xf32>
    %9 = math.tanh %8 : vector<8x8x512xf32>
    %10 = vector.shape_cast %9 : vector<8x8x512xf32> to vector<64x512xf32>
    %c0_5 = arith.constant 0 : index
    %c0_6 = arith.constant 0 : index
    %11 = vector.load %arg4[%c0_5, %c0_6] : memref<1x512xf32, #tpu.memory_space<vmem>>, vector<1x512xf32>
    %12 = vector.shape_cast %11 : vector<1x512xf32> to vector<512x1xf32>
    %cst = arith.constant dense<0.000000e+00> : vector<64x1xf32>
    %13 = tpu.matmul %10, %12, %cst {dimension_numbers = #tpu.dot_dimension_numbers<[1], [0], [0], [1], [0, 0, 1, 1], [], []>} : vector<64x512xf32>, vector<512x1xf32>, vector<64x1xf32> -> vector<64x1xf32>
    %14 = vector.shape_cast %13 : vector<64x1xf32> to vector<8x8xf32>
    %15 = vector.broadcast %3 : f32 to vector<8x8xf32>
    %16 = arith.addf %14, %15 : vector<8x8xf32>
    %17 = arith.negf %16 : vector<8x8xf32>
    %18 = math.exp %17 : vector<8x8xf32>
    %cst_7 = arith.constant 1.000000e+00 : f32
    %19 = vector.broadcast %cst_7 : f32 to vector<8x8xf32>
    %20 = arith.addf %19, %18 : vector<8x8xf32>
    %21 = arith.divf %19, %20 : vector<8x8xf32>
    %cst_8 = arith.constant dense<0.000000e+00> : vector<8x512xf32>
    %22 = tpu.matmul %21, %1, %cst_8 {dimension_numbers = #tpu.dot_dimension_numbers<[1], [0], [0], [1], [0, 0, 1, 1], [], []>} : vector<8x8xf32>, vector<8x512xf32>, vector<8x512xf32> -> vector<8x512xf32>
    %c0_9 = arith.constant 0 : index
    %c0_10 = arith.constant 0 : index
    %c0_11 = arith.constant 0 : index
    %23 = vector.load %arg6[%c0_9, %c0_10, %c0_11] : memref<1x8x512xf32, #tpu.memory_space<vmem>>, vector<1x8x512xf32>
    %24 = vector.shape_cast %23 : vector<1x8x512xf32> to vector<8x512xf32>
    %25 = vector.shape_cast %22 : vector<8x512xf32> to vector<1x8x512xf32>
    tpu.vector_store %arg6[%c0_9, %c0_10, %c0_11], %25 {strides = array<i32>} : memref<1x8x512xf32, #tpu.memory_space<vmem>>, vector<1x8x512xf32>,
    return
  }
  func.func @transform_0(%arg0: i32, %arg1: i32) -> (i32, i32, i32) {
    %c0_i32 = arith.constant 0 : i32
    %c0_i32_0 = arith.constant 0 : i32
    %c0_i32_1 = arith.constant 0 : i32
    return %arg0, %c0_i32, %c0_i32_0 : i32, i32, i32
  }
  func.func @transform_1(%arg0: i32, %arg1: i32) -> (i32, i32) {
    %c0_i32 = arith.constant 0 : i32
    %c0_i32_0 = arith.constant 0 : i32
    return %arg1, %c0_i32 : i32, i32
  }
  func.func @transform_2(%arg0: i32, %arg1: i32) -> (i32, i32) {
    %c0_i32 = arith.constant 0 : i32
    %c0_i32_0 = arith.constant 0 : i32
    %c0_i32_1 = arith.constant 0 : i32
    return %c0_i32, %c0_i32_0 : i32, i32
  }
  func.func @transform_3(%arg0: i32, %arg1: i32) -> i32 {
    %c0_i32 = arith.constant 0 : i32
    %c0_i32_0 = arith.constant 0 : i32
    return %c0_i32 : i32
  }
  func.func @transform_4(%arg0: i32, %arg1: i32) -> (i32, i32, i32) {
    %c0_i32 = arith.constant 0 : i32
    %c0_i32_0 = arith.constant 0 : i32
    return %arg0, %arg1, %c0_i32 : i32, i32, i32
  }
}

</mosaic_0001>

<bundles_post_ra>
// kernel: tpu_custom_call.1
= control target key start
LH: loop header
LB: loop body
LE: loop exit
PB: predicated region body
PF: predicated region fallthrough
CT: control target
= control target key end

     0   :  { %s2483_s0 = inlined_call_operand.hbm [shape: f32[2,8,512], index: 0, kind: input, shape index: {}]   ;;  %s2484_s1 = inlined_call_operand.hbm [shape: f32[8,512], index: 1, kind: input, shape index: {}]   ;;  %s2485_s2 = inlined_call_operand.vmem [shape: f32[1,512], index: 2, kind: input, shape index: {}]   ;;  %s2486_s3 = inlined_call_operand.<no memory space> [shape: f32[1], index: 3, kind: input, shape index: {}]   ;;  %s2487_s4 = inlined_call_operand.hbm [shape: f32[2,8,512], index: 4, kind: output, shape index: {}]  }
   0x1   :  { %9 = sst [smem:[#allocation2]] %s2486_s3 }
   0x2   :  { %10 = vsyncpa [#allocation4], 0 }
   0x3   :  { %12 = vsyncpa [#allocation4 + $0x1], 0 }
   0x4   :  { %13 = vsyncpa [#allocation7], 0 }
   0x5   :  { %14 = vsyncpa [#allocation5], 0 }
   0x6   :  { %16 = vsyncpa [#allocation5 + $0x1], 0  ;;  %s2016_s17 = smov 0   ;;  %s2018_s18 = smov 0  }
   0x7   :  { %s2020_s19 = smov 0   ;;  %s2022_s20 = smov 0  }
   0x8   :  { %s2024_s21 = smov 0   ;;  %s2026_s22 = smov 0  }
   0x9 LB: > { %s1451_s3 = sadd.s32 4294967295, %s1980_s22   ;;  %s1452_s23 = sadd.s32 4294967294, %s1980_s22   ;;  %s1980_s22 = sphi %s2026_s22, %s22_s22   ;;  %s1976_s21 = sphi %s2024_s21, %s2512_s21   ;;  %s1972_s20 = sphi %s2022_s20, %s2511_s20   ;;  %s1968_s19 = sphi %s2020_s19, %s2510_s19   ;;  %s1964_s18 = sphi %s2018_s18, %s2509_s18   ;;  %s1960_s17 = sphi %s2016_s17, %s2508_s17  }
   0xa   : > { %p54_p0 = scmp.ne.s32.totalorder %s1964_s18, %s1960_s17  ;;  %p2050_p1 = scmp.eq.s32.totalorder %s1451_s3, 0 }
   0xb   : > { %p2054_p2 = scmp.eq.s32.totalorder %s1451_s3, 1  ;;  %p154_p3 = scmp.eq.s32.totalorder %s1452_s23, 1 }
   0xc   : > { %s2492_s24 = scalar_select %p2050_p1, 1, 0 }
   0xd   : > { %s2493_s25 = scalar_select %p2054_p2, 1, 0 }
   0xe   : > { %p2060_p4 = por %p2050_p1, %p54_p0  ;;  %p1453_p5 = scmp.ge.s32.totalorder %s1980_s22, 1 }
   0xf   : > { %p2065_p6 = por %p154_p3, %p54_p0  ;;  %p161_p7 = scmp.lt.s32.totalorder %s1980_s22, 3 }
  0x10   : > { %s2494_s26 = scalar_select %p2060_p4, 1, 0 }
  0x11   : > { %s2495_s27 = scalar_select %p2065_p6, 1, 0 }
  0x12   : > { %p2070_p8 = pnand %p1453_p5, %p161_p7  ;;  %s1982_s29 = smov [#allocation6]  }
  0x13   : > { %s177_s30 = sshll.u32 %s1982_s29, 4  ;;  %s34_s6 = sadd.s32 1, %s1976_s21  ;;  %s178_s30 = int_to_ptr.vmem [resolvable:$true] %s177_s30 }
  0x14   : > { %s2496_s28 = scalar_select %p2070_p8, 1, 0 }
  0x15   : > { %p1664_p10 = pneg %p2070_p8  ;;  %s41_s7 = sadd.s32 1, %s1968_s19 }
  0x16   : > { %p2085_p12 = scmp.ge.s32.totalorder %s34_s6, 2  ;;  %s1836_s11 = scalar_lea.hbm %s2484_s1, 512 }
  0x17   : > { %p2079_p11 = pnand %p1664_p10, %p2050_p1  ;;  %p1837_p13 = scmp.ne.s32.totalorder %s2484_s1, %s1836_s11 }
  0x18   : > { %s2498_s8 = scalar_select %p2085_p12, 1, 0 }
  0x19   : > { %p1838_p0 = pneg %p2079_p11  ;;  %p1843_p7 = scmp.lt.u32.totalorder %s1836_s11, %s2484_s1 }
  0x1b   : > { %p1839_p3 = pnand %p1838_p0, %p1837_p13 }
  0x1d   : > { %p1840_p5 = pneg %p1839_p3 }
  0x1f   : > { %p1845_p10 = pnand %p1843_p7, %p1840_p5 }
  0x21   : > { %1848 = shalt.err (!%p1845_p10)
}
  0x22   : > { %s1849_s16 = scalar_lea.vmem %s178_s30, 512  ;;  %p1857_p4 = scmp.lt.s32.totalorder %s178_s30, %s178_s30 }
  0x23   : > { %p1850_p9 = scmp.ne.s32.totalorder %s178_s30, %s1849_s16  ;;  %p1858_p8 = scmp.lt.s32.totalorder %s1849_s16, %s1849_s16 }
  0x25   : > { %p1852_p6 = pnand %p1850_p9, %p1838_p0  ;;  %p1859_p2 = por %p1858_p8, %p1857_p4 }
  0x27   : > { %p1853_p1 = pneg %p1852_p6 }
  0x29   : > { %p1860_p12 = pnand %p1859_p2, %p1853_p1 }
  0x2b   : > { %1863 = shalt.err (!%p1860_p12)
}
  0x2c   : > { %1667 = dma.hbm_to_vmem [thread:$0]  (!%p2079_p11), %s2484_s1, 512, %s178_s30, [#allocation7]  }
  0x2d   : > { %p2499_p4 = scmp.ne.s32.totalorder %s2498_s8, 0  ;;  %p48_p1 = scmp.ne.s32.totalorder %s1968_s19, %s1964_s18 }
  0x2e   : > { %p49_p2 = scmp.eq.s32.totalorder %s1980_s22, 0  ;;  %p1677_p6 = scmp.lt.s32.totalorder %s1980_s22, 2 }
  0x2f   : > { %s2514_s6 = smov (%p2499_p4, %s34_s6), 0  ;;  %p2500_p12 = scmp.ne.s32.totalorder %s2493_s25, 0 }
  0x30   : > { %s38_s29 = ssub.s32 %s1976_s21, %s2514_s6  ;;  %p50_p9 = por %p49_p2, %p48_p1 }
  0x31   : > { %p39_p8 = scmp.eq.s32.totalorder %s38_s29, 0  ;;  %p2117_p13 = por %p2500_p12, %p48_p1 }
  0x32   : > { %s194_s9 = sand.u32 1, %s1968_s19   ;;  %s1478_s8 = sshll.u32 %s1976_s21, 9 }
  0x33   : > { %s2125_s10 = scalar_select %p39_p8, %s1968_s19, %s41_s7  }
  0x34   : > { %s1456_s30 = sshll.u32 %s194_s9, 5  ;;  %s2131_s13 = scalar_lea.hbm %s2483_s0, %s1478_s8 }
  0x35   : > { %s198_s25 = scalar_lea.vmem [#allocation3], %s1456_s30  ;;  %p2135_p11 = pnand %p1677_p6, %p50_p9 }
  0x36   : > { %s206_s14 = sshll.u32 %s198_s25, 4  ;;  %s195_s7 = scalar_lea.sflag [#allocation4], %s194_s9  ;;  %s2133_s14 = int_to_ptr.vmem [resolvable:$true] %s206_s14 }
  0x37   : > { %s1864_s16 = scalar_lea.hbm %s2131_s13, 512  ;;  %p1866_p3 = pneg %p2135_p11 }
  0x38   : > { %p1865_p0 = scmp.ne.s32.totalorder %s2131_s13, %s1864_s16  ;;  %s1869_s29 = scalar_lea.hbm %s2483_s0, 1024 }
  0x39   : > { %p1870_p10 = scmp.lt.u32.totalorder %s2131_s13, %s2483_s0  ;;  %p1871_p4 = scmp.lt.u32.totalorder %s1869_s29, %s1864_s16 }
  0x3a   : > { %p1867_p5 = pnand %p1866_p3, %p1865_p0  ;;  %p1873_p2 = scmp.lt.u32.totalorder %s1864_s16, %s2131_s13 }
  0x3b   : > { %p1872_p1 = por %p1871_p4, %p1870_p10 }
  0x3c   : > { %p1868_p7 = pneg %p1867_p5 }
  0x3d   : > { %p1874_p6 = por %p1873_p2, %p1872_p1 }
  0x3f   : > { %p1875_p8 = pnand %p1874_p6, %p1868_p7 }
  0x41   : > { %1878 = shalt.err (!%p1875_p8)
}
  0x42   : > { %s1879_s9 = scalar_lea.vmem %s2133_s14, 512  ;;  %s1983_s11 = smov [#allocation3]  }
  0x43   : > { %p1880_p9 = scmp.ne.s32.totalorder %s2133_s14, %s1879_s9  ;;  %s1884_s12 = sshll.u32 %s1983_s11, 4  ;;  %s1885_s12 = int_to_ptr.vmem [resolvable:$false] %s1884_s12 }
  0x44   : > { %s1886_s25 = scalar_lea.vmem %s1885_s12, 1024  ;;  %p1887_p5 = scmp.lt.s32.totalorder %s2133_s14, %s1885_s12 }
  0x45   : > { %p1882_p12 = pnand %p1880_p9, %p1866_p3  ;;  %p1888_p10 = scmp.lt.s32.totalorder %s1886_s25, %s1879_s9 }
  0x47   : > { %p1883_p0 = pneg %p1882_p12  ;;  %p1889_p4 = por %p1888_p10, %p1887_p5 }
  0x49   : > { %p1890_p1 = pnand %p1889_p4, %p1883_p0 }
  0x4b   : > { %1893 = shalt.err (!%p1890_p1)
}
  0x4c   : > { %1671 = dma.hbm_to_vmem [thread:$0]  (!%p2135_p11), %s2131_s13, 512, %s2133_s14, %s195_s7  }
  0x4d   : > { %p2503_p7 = scmp.ne.s32.totalorder %s2496_s28, 0 }
  0x4e   : > { %s2167_s16 = sand.u32 (!%p2503_p7), 1, %s1964_s18   ;;  %p2504_p3 = scmp.ne.s32.totalorder (!%p2503_p7), %s2494_s26, 0 }
  0x4f   : > { %215 = sbr.rel (%p2503_p7) target bundleno = 975 (0x3cf), region = 36  ;;  %s1460_s3 = sshll.u32 (!%p2503_p7), %s2167_s16, 5 }
  0x50   : > { %s218_s23 = scalar_lea.sflag (!%p2503_p7), [#allocation4], %s2167_s16  ;;  %s2173_s29 = scalar_lea.vmem (!%p2503_p7), [#allocation3], %s1460_s3 }
  0x56   : > { %1947 = dma.done.wait (%p2504_p3), %s218_s23, 512  }
  0x57   : > { %1949 = vsyncadd (%p2504_p3), %s218_s23, 4294966784  ;;  %p2505_p11 = scmp.ne.s32.totalorder %s2492_s24, 0 }
  0x59   : > { %1951 = dma.done.wait (%p2505_p11), [#allocation7], 512  }
  0x5a   : > { %1953 = vsyncadd (%p2505_p11), [#allocation7], 4294966784  ;;  %v270_v0 = vlaneseq  ;;  %v555_v5 = vld [vmem:[%s2485_s2] sm:$0xf]  ;;  %v1984_v15 = vmov 1966171168  }
  0x5b   : > { %v268_v16 = vunpack.c.l.s4 %v1984_v15  ;;  %v1734_v18 = vld [vmem:[#allocation6] ss:$8 sps:$4 sm:$0xff]   ;;  %v1737_v19 = vld [vmem:[#allocation6 + $0x10] ss:$8 sps:$4 sm:$0xff]   ;;  %s258_s24 = sld [smem:[#allocation2]]  ;;  %vm1178_vm0 = vcmask 1041409  }
  0x5c   : > { %v2184_v1 = vshrl.u32 %v270_v0, 7  ;;  %v2280_v27 = vld [vmem:[%s2173_s29 + $0x8] sm:$0xff]  ;;  %v2289_v31 = vld [vmem:[%s2173_s29 + $0x18] sm:$0xff]  ;;  %vm1180_vm1 = vcmask 1042434   ;;  %vm1182_vm2 = vcmask 1043459   ;;  %vm1184_vm3 = vcmask 1044484  }
  0x5d   : > { %v269_v17 = vunpack.c.0.s8 %v268_v16  ;;  %vm1186_vm4 = vcmask 1045509   ;;  %vm1188_vm5 = vcmask 1046534   ;;  %vm1190_vm6 = vcmask 1047559   ;;  %s249_s13 = scalar_lea.vmem [#allocation8], %s1460_s3  ;;  %s1479_s15 = sshll.u32 %s1972_s20, 9 }
  0x5e   : > { %v2187_v2 = vsub.s32 3, %v2184_v1  ;;  %v2190_v3 = vsub.s32 1, %v2184_v1  ;;  %v2193_v4 = vsub.s32 0, %v2184_v1  ;;  %v2210_v11 = vsub.s32 2, %v2184_v1  ;;  %s1358_s14 = sshll.u32 %s249_s13, 4  ;;  %s2436_s8 = scalar_lea.hbm %s2487_s4, %s1479_s15  ;;  %s2431_s14 = int_to_ptr.vmem [resolvable:$true] %s1358_s14 }
  0x5f   : > { %v2264_v20 = vsub.s32 %v269_v17, %v2184_v1  ;;  %vm1192_vm7 = vcmask 64512   ;;  %s1342_s9 = scalar_lea.sflag [#allocation5], %s2167_s16  ;;  %s1894_s20 = scalar_lea.vmem %s2431_s14, 512 }
  0x60   : > { %v572_v6 = vrot.slane %v555_v5, %v2187_v2  ;;  %v564_v7 = vrot.slane %v555_v5, %v2190_v3  ;;  %v560_v10 = vrot.slane %v555_v5, %v2193_v4  ;;  %v568_v13 = vrot.slane %v555_v5, %v2210_v11  ;;  %p1895_p2 = scmp.ne.s32.totalorder %s2431_s14, %s1894_s20  ;;  %s1987_s11 = smov [#allocation8]  }
  0x61   : > { %v273_v21 = vrot.slane %v1734_v18, %v2264_v20  ;;  %v287_v22 = vrot.slane %v1737_v19, %v2264_v20  ;;  %s1898_s12 = sshll.u32 %s1987_s11, 4  ;;  %s1899_s12 = int_to_ptr.vmem [resolvable:$false] %s1898_s12 }
  0x62   : > { %v2201_v8 = vrot.slane %v572_v6, %v2193_v4  ;;  %v2204_v9 = vrot.slane %v564_v7, %v2193_v4  ;;  %v2215_v12 = vrot.slane %v560_v10, %v2193_v4  ;;  %v2221_v14 = vrot.slane %v568_v13, %v2193_v4  ;;  %p1896_p6 = pnand %p1895_p2, %p2117_p13  ;;  %s1900_s25 = scalar_lea.vmem %s1899_s12, 1024 }
  0x63   : > { %v295_v23 = vcombine.low %v273_v21, %v287_v22  ;;  %v296_v25 = vcombine.high %v273_v21, %v287_v22  ;;  %p1901_p9 = scmp.lt.s32.totalorder %s2431_s14, %s1899_s12  ;;  %p1902_p12 = scmp.lt.s32.totalorder %s1900_s25, %s1894_s20 }
  0x64   : > { %783 = vbcast.lane.b32.xlu1 %v2201_v8, 256  ;;  %649 = vbcast.lane.b32.xlu0 %v2204_v9, 256  ;;  %p1897_p8 = pneg %p1896_p6 }
  0x65   : > { %v2273_v24 = vrot.slane %v295_v23, %v2264_v20  ;;  %v2285_v29 = vrot.slane %v296_v25, %v2264_v20  ;;  %p1903_p0 = por %p1902_p12, %p1901_p9 }
  0x67   : > { %v338_v26 = vrot.slane %v2273_v24, %v2190_v3  ;;  %v346_v28 = vrot.slane %v2273_v24, %v2187_v2  ;;  %p1904_p5 = pnand %p1903_p0, %p1897_p8 }
  0x68   : > { %787 = vbcast.lane.b32.xlu1 %v2201_v8, 264  ;;  %653 = vbcast.lane.b32.xlu0 %v2204_v9, 264 }
  0x69   : > { %v492_v30 = vmul.f32 %v338_v26, %v2280_v27  ;;  %v494_v32 = vmul.f32 %v346_v28, %v2289_v31 }
  0x6b   : > { %1740 = vtanh.f32 %v492_v30 }
  0x6c   : > { %586 = vbcast.lane.b32.xlu1 %v2215_v12, 264  ;;  %582 = vbcast.lane.b32.xlu0 %v2215_v12, 256  ;;  %1742 = vtanh.f32 %v494_v32 }
  0x70   : > { %720 = vbcast.lane.b32.xlu1 %v2221_v14, 264  ;;  %716 = vbcast.lane.b32.xlu0 %v2221_v14, 256 }
  0x74   : > { %661 = vbcast.lane.b32.xlu1 %v2204_v9, 280  ;;  %657 = vbcast.lane.b32.xlu0 %v2204_v9, 272 }
  0x75   : > { %v1741_v33 = vpop.eup %1740 }
  0x76   : > { %909 = vmatprep.mubr.f32.mxu0 %v1741_v33  ;;  %v1743_v36 = vpop.eup %1742 }
  0x77   : > { %1014 = vmatprep.mubr.f32.mxu1 %v1743_v36 }
  0x78   : > { %795 = vbcast.lane.b32.xlu1 %v2201_v8, 280  ;;  %791 = vbcast.lane.b32.xlu0 %v2201_v8, 272 }
  0x7c   : > { %594 = vbcast.lane.b32.xlu1 %v2215_v12, 280  ;;  %590 = vbcast.lane.b32.xlu0 %v2215_v12, 272 }
  0x80   : > { %728 = vbcast.lane.b32.xlu1 %v2221_v14, 280  ;;  %724 = vbcast.lane.b32.xlu0 %v2221_v14, 272 }
  0x84   : > { %669 = vbcast.lane.b32.xlu1 %v2204_v9, 296  ;;  %665 = vbcast.lane.b32.xlu0 %v2204_v9, 288 }
  0x88   : > { %803 = vbcast.lane.b32.xlu1 %v2201_v8, 296  ;;  %799 = vbcast.lane.b32.xlu0 %v2201_v8, 288 }
  0x8c   : > { %602 = vbcast.lane.b32.xlu1 %v2215_v12, 296  ;;  %598 = vbcast.lane.b32.xlu0 %v2215_v12, 288 }
  0x90   : > { %736 = vbcast.lane.b32.xlu1 %v2221_v14, 296  ;;  %732 = vbcast.lane.b32.xlu0 %v2221_v14, 288 }
  0x94   : > { %677 = vbcast.lane.b32.xlu1 %v2204_v9, 312  ;;  %673 = vbcast.lane.b32.xlu0 %v2204_v9, 304 }
  0x98   : > { %811 = vbcast.lane.b32.xlu1 %v2201_v8, 312  ;;  %807 = vbcast.lane.b32.xlu0 %v2201_v8, 304 }
  0x9c   : > { %610 = vbcast.lane.b32.xlu1 %v2215_v12, 312  ;;  %606 = vbcast.lane.b32.xlu0 %v2215_v12, 304 }
  0xa0   : > { %744 = vbcast.lane.b32.xlu1 %v2221_v14, 312  ;;  %740 = vbcast.lane.b32.xlu0 %v2221_v14, 304 }
  0xa4   : > { %685 = vbcast.lane.b32.xlu1 %v2204_v9, 328  ;;  %681 = vbcast.lane.b32.xlu0 %v2204_v9, 320 }
  0xa8   : > { %819 = vbcast.lane.b32.xlu1 %v2201_v8, 328  ;;  %815 = vbcast.lane.b32.xlu0 %v2201_v8, 320 }
  0xac   : > { %618 = vbcast.lane.b32.xlu1 %v2215_v12, 328  ;;  %614 = vbcast.lane.b32.xlu0 %v2215_v12, 320 }
  0xb0   : > { %752 = vbcast.lane.b32.xlu1 %v2221_v14, 328  ;;  %748 = vbcast.lane.b32.xlu0 %v2221_v14, 320 }
  0xb4   : > { %693 = vbcast.lane.b32.xlu1 %v2204_v9, 344  ;;  %689 = vbcast.lane.b32.xlu0 %v2204_v9, 336 }
  0xb8   : > { %827 = vbcast.lane.b32.xlu1 %v2201_v8, 344  ;;  %823 = vbcast.lane.b32.xlu0 %v2201_v8, 336 }
  0xbc   : > { %626 = vbcast.lane.b32.xlu1 %v2215_v12, 344  ;;  %622 = vbcast.lane.b32.xlu0 %v2215_v12, 336 }
  0xc0   : > { %760 = vbcast.lane.b32.xlu1 %v2221_v14, 344  ;;  %756 = vbcast.lane.b32.xlu0 %v2221_v14, 336 }
  0xc4   : > { %701 = vbcast.lane.b32.xlu1 %v2204_v9, 360  ;;  %697 = vbcast.lane.b32.xlu0 %v2204_v9, 352 }
  0xc8   : > { %835 = vbcast.lane.b32.xlu1 %v2201_v8, 360  ;;  %831 = vbcast.lane.b32.xlu0 %v2201_v8, 352 }
  0xcc   : > { %634 = vbcast.lane.b32.xlu1 %v2215_v12, 360  ;;  %630 = vbcast.lane.b32.xlu0 %v2215_v12, 352 }
  0xd0   : > { %768 = vbcast.lane.b32.xlu1 %v2221_v14, 360  ;;  %764 = vbcast.lane.b32.xlu0 %v2221_v14, 352 }
  0xd4   : > { %709 = vbcast.lane.b32.xlu1 %v2204_v9, 376  ;;  %705 = vbcast.lane.b32.xlu0 %v2204_v9, 368 }
  0xd6   : > { %v784_v34 = vpop.permute.xlu1 %783  ;;  %v650_v35 = vpop.permute.xlu0 %649 }
  0xd8   : > { %843 = vbcast.lane.b32.xlu1 %v2201_v8, 376  ;;  %839 = vbcast.lane.b32.xlu0 %v2201_v8, 368 }
  0xda   : > { %v788_v37 = vpop.permute.xlu1 %787  ;;  %v654_v38 = vpop.permute.xlu0 %653 }
  0xdb   : > { %v1592_v39 = vpack.c.bf16 %v654_v38, %v650_v35  ;;  %v1624_v40 = vpack.c.bf16 %v788_v37, %v784_v34 }
  0xdc   : > { %642 = vbcast.lane.b32.xlu1 %v2215_v12, 376  ;;  %638 = vbcast.lane.b32.xlu0 %v2215_v12, 368 }
  0xdd   : > { %1593 = vmatprep.subr.bf16.mxu0 %v1592_v39  ;;  %1625 = vmatprep.subr.bf16.mxu1 %v1624_v40 }
  0xde   : > { %v587_v41 = vpop.permute.xlu1 %586  ;;  %v583_v42 = vpop.permute.xlu0 %582 }
  0xdf   : > { %v1594_v43 = vpack.c.bf16 %v587_v41, %v583_v42 }
  0xe0   : > { %776 = vbcast.lane.b32.xlu1 %v2221_v14, 376  ;;  %772 = vbcast.lane.b32.xlu0 %v2221_v14, 368 }
  0xe1   : > { %1595 = vmatpush3.bf16.msra.mxu0 %v1594_v43 }
  0xe2   : > { %v721_v44 = vpop.permute.xlu1 %720  ;;  %v717_v45 = vpop.permute.xlu0 %716 }
  0xe3   : > { %v1626_v46 = vpack.c.bf16 %v721_v44, %v717_v45 }
  0xe5   : > { %1627 = vmatpush3.bf16.msra.mxu1 %v1626_v46 }
  0xe6   : > { %v662_v47 = vpop.permute.xlu1 %661  ;;  %v658_v48 = vpop.permute.xlu0 %657 }
  0xe7   : > { %v1596_v49 = vpack.c.bf16 %v662_v47, %v658_v48 }
  0xe9   : > { %1597 = vmatprep.subr.bf16.mxu0 %v1596_v49 }
  0xea   : > { %v796_v50 = vpop.permute.xlu1 %795  ;;  %v792_v51 = vpop.permute.xlu0 %791 }
  0xeb   : > { %v1628_v52 = vpack.c.bf16 %v796_v50, %v792_v51 }
  0xed   : > { %1629 = vmatprep.subr.bf16.mxu1 %v1628_v52 }
  0xee   : > { %v595_v53 = vpop.permute.xlu1 %594  ;;  %v591_v54 = vpop.permute.xlu0 %590 }
  0xef   : > { %v1598_v55 = vpack.c.bf16 %v595_v53, %v591_v54 }
  0xf1   : > { %1599 = vmatpush3.bf16.msra.mxu0 %v1598_v55 }
  0xf2   : > { %v729_v56 = vpop.permute.xlu1 %728  ;;  %v725_v57 = vpop.permute.xlu0 %724 }
  0xf3   : > { %v1630_v58 = vpack.c.bf16 %v729_v56, %v725_v57 }
  0xf5   : > { %1631 = vmatpush3.bf16.msra.mxu1 %v1630_v58 }
  0xf6   : > { %v670_v59 = vpop.permute.xlu1 %669  ;;  %v666_v60 = vpop.permute.xlu0 %665 }
  0xf7   : > { %v1600_v61 = vpack.c.bf16 %v670_v59, %v666_v60  ;;  %v1736_v60 = vld [vmem:[#allocation6 + $0x4] ss:$8 sps:$4 sm:$0xff]  }
  0xf9   : > { %1601 = vmatprep.subr.bf16.mxu0 %v1600_v61  ;;  %v1739_v61 = vld [vmem:[#allocation6 + $0x14] ss:$8 sps:$4 sm:$0xff]  }
  0xfa   : > { %v804_v62 = vpop.permute.xlu1 %803  ;;  %v800_v63 = vpop.permute.xlu0 %799 }
  0xfb   : > { %v1632_v5 = vpack.c.bf16 %v804_v62, %v800_v63 }
  0xfd   : > { %1633 = vmatprep.subr.bf16.mxu1 %v1632_v5  ;;  %v334_v5 = vrot.slane %v2273_v24, %v2193_v4 }
  0xfe   : > { %v603_v6 = vpop.permute.xlu1 %602  ;;  %v599_v7 = vpop.permute.xlu0 %598 }
  0xff   : > { %v1602_v8 = vpack.c.bf16 %v603_v6, %v599_v7  ;;  %v2307_v7 = vld [vmem:[%s2173_s29] sm:$0xff] }
 0x101   : > { %1603 = vmatpush3.bf16.msra.mxu0 %v1602_v8  ;;  %v354_v8 = vrot.slane %v2285_v29, %v2190_v3 }
 0x102   : > { %v737_v9 = vpop.permute.xlu1 %736  ;;  %v733_v10 = vpop.permute.xlu0 %732 }
 0x103   : > { %v1634_v12 = vpack.c.bf16 %v737_v9, %v733_v10  ;;  %v280_v9 = vrot.slane %v1736_v60, %v2264_v20  ;;  %v294_v10 = vrot.slane %v1739_v61, %v2264_v20 }
 0x105   : > { %1635 = vmatpush3.bf16.msra.mxu1 %v1634_v12  ;;  %v327_v12 = vcombine.high %v2273_v24, %v2273_v24 }
 0x106   : > { %v678_v13 = vpop.permute.xlu1 %677  ;;  %v674_v14 = vpop.permute.xlu0 %673 }
 0x107   : > { %v1604_v15 = vpack.c.bf16 %v678_v13, %v674_v14  ;;  %v342_v13 = vrot.slane %v2273_v24, %v2210_v11  ;;  %v329_v24 = vcombine.high %v2285_v29, %v2285_v29 }
 0x109   : > { %1605 = vmatprep.subr.bf16.mxu0 %v1604_v15 }
 0x10a   : > { %v812_v16 = vpop.permute.xlu1 %811  ;;  %v808_v17 = vpop.permute.xlu0 %807 }
 0x10b   : > { %v1636_v18 = vpack.c.bf16 %v812_v16, %v808_v17  ;;  %v491_v16 = vmul.f32 %v334_v5, %v2307_v7  ;;  %v2319_v17 = vld [vmem:[%s2173_s29 + $0x10] sm:$0xff] }
 0x10d   : > { %1637 = vmatprep.subr.bf16.mxu1 %v1636_v18  ;;  %v350_v18 = vrot.slane %v2285_v29, %v2193_v4  ;;  %1744 = vtanh.f32 %v491_v16 }
 0x10e   : > { %v611_v19 = vpop.permute.xlu1 %610  ;;  %v607_v21 = vpop.permute.xlu0 %606 }
 0x10f   : > { %v1606_v22 = vpack.c.bf16 %v611_v19, %v607_v21  ;;  %v496_v21 = vmul.f32 %v354_v8, %v2280_v27 }
 0x111   : > { %1607 = vmatpush3.bf16.msra.mxu0 %v1606_v22  ;;  %v362_v22 = vrot.slane %v2285_v29, %v2187_v2  ;;  %1746 = vtanh.f32 %v496_v21 }
 0x112   : > { %v745_v23 = vpop.permute.xlu1 %744  ;;  %v741_v25 = vpop.permute.xlu0 %740 }
 0x113   : > { %v1638_v26 = vpack.c.bf16 %v745_v23, %v741_v25  ;;  %v297_v23 = vcombine.low %v280_v9, %v294_v10  ;;  %v370_v25 = vrot.slane %v327_v12, %v2190_v3 }
 0x115   : > { %1639 = vmatpush3.bf16.msra.mxu1 %v1638_v26  ;;  %v493_v26 = vmul.f32 %v342_v13, %v2319_v17 }
 0x116   : > { %v686_v28 = vpop.permute.xlu1 %685  ;;  %v682_v30 = vpop.permute.xlu0 %681 }
 0x117   : > { %v1608_v32 = vpack.c.bf16 %v686_v28, %v682_v30  ;;  %v358_v28 = vrot.slane %v2285_v29, %v2210_v11  ;;  %v386_v29 = vrot.slane %v329_v24, %v2190_v3  ;;  %1748 = vtanh.f32 %v493_v26  ;;  %v1745_v61 = vpop.eup %1744 }
 0x119   : > { %1609 = vmatprep.subr.bf16.mxu0 %v1608_v32 }
 0x11a   : > { %v820_v33 = vpop.permute.xlu1 %819  ;;  %v816_v34 = vpop.permute.xlu0 %815 }
 0x11b   : > { %v1640_v35 = vpack.c.bf16 %v820_v33, %v816_v34  ;;  %v495_v33 = vmul.f32 %v350_v18, %v2307_v7  ;;  %v366_v34 = vrot.slane %v327_v12, %v2193_v4 }
 0x11d   : > { %1641 = vmatprep.subr.bf16.mxu1 %v1640_v35  ;;  %1750 = vtanh.f32 %v495_v33 }
 0x11e   : > { %v619_v36 = vpop.permute.xlu1 %618  ;;  %v615_v37 = vpop.permute.xlu0 %614 }
 0x11f   : > { %v1610_v38 = vpack.c.bf16 %v619_v36, %v615_v37  ;;  %v498_v36 = vmul.f32 %v362_v22, %v2289_v31  ;;  %v378_v37 = vrot.slane %v327_v12, %v2187_v2 }
 0x121   : > { %1611 = vmatpush3.bf16.msra.mxu0 %v1610_v38  ;;  %v298_v38 = vcombine.high %v280_v9, %v294_v10  ;;  %1752 = vtanh.f32 %v498_v36 }
 0x122   : > { %v753_v39 = vpop.permute.xlu1 %752  ;;  %v749_v40 = vpop.permute.xlu0 %748 }
 0x123   : > { %v1642_v41 = vpack.c.bf16 %v753_v39, %v749_v40  ;;  %v2337_v39 = vrot.slane %v297_v23, %v2264_v20  ;;  %v500_v40 = vmul.f32 %v370_v25, %v2280_v27 }
 0x125   : > { %1643 = vmatpush3.bf16.msra.mxu1 %v1642_v41  ;;  %v497_v41 = vmul.f32 %v358_v28, %v2319_v17  ;;  %1754 = vtanh.f32 %v500_v40  ;;  %v410_v60 = vrot.slane %v2337_v39, %v2187_v2  ;;  %v2366_v5 = vcombine.high %v2337_v39, %v2337_v39 }
 0x126   : > { %v694_v42 = vpop.permute.xlu1 %693  ;;  %v690_v43 = vpop.permute.xlu0 %689  ;;  %v406_v9 = vrot.slane %v2337_v39, %v2210_v11 }
 0x127   : > { %v1612_v44 = vpack.c.bf16 %v694_v42, %v690_v43  ;;  %v374_v42 = vrot.slane %v327_v12, %v2210_v11  ;;  %1756 = vtanh.f32 %v497_v41  ;;  %v510_v18 = vmul.f32 %v410_v60, %v2289_v31 }
 0x128   : > { %v434_v23 = vrot.slane %v2366_v5, %v2190_v3  ;;  %v509_v26 = vmul.f32 %v406_v9, %v2319_v17  ;;  %v430_v33 = vrot.slane %v2366_v5, %v2193_v4  ;;  %v442_v36 = vrot.slane %v2366_v5, %v2187_v2 }
 0x129   : > { %1613 = vmatprep.subr.bf16.mxu0 %v1612_v44 }
 0x12a   : > { %v828_v45 = vpop.permute.xlu1 %827  ;;  %v824_v46 = vpop.permute.xlu0 %823 }
 0x12b   : > { %v1644_v47 = vpack.c.bf16 %v828_v45, %v824_v46  ;;  %v499_v45 = vmul.f32 %v366_v34, %v2307_v7  ;;  %v382_v46 = vrot.slane %v329_v24, %v2193_v4 }
 0x12d   : > { %1645 = vmatprep.subr.bf16.mxu1 %v1644_v47  ;;  %1758 = vtanh.f32 %v499_v45  ;;  %v518_v45 = vmul.f32 %v442_v36, %v2289_v31 }
 0x12e   : > { %v627_v48 = vpop.permute.xlu1 %626  ;;  %v623_v49 = vpop.permute.xlu0 %622 }
 0x12f   : > { %v1614_v50 = vpack.c.bf16 %v627_v48, %v623_v49  ;;  %v502_v48 = vmul.f32 %v378_v37, %v2289_v31  ;;  %v394_v49 = vrot.slane %v329_v24, %v2187_v2 }
 0x131   : > { %1615 = vmatpush3.bf16.msra.mxu0 %v1614_v50  ;;  %v2348_v50 = vrot.slane %v298_v38, %v2264_v20  ;;  %v398_v20 = vrot.slane %v2337_v39, %v2193_v4  ;;  %1760 = vtanh.f32 %v502_v48  ;;  %v516_v38 = vmul.f32 %v434_v23, %v2280_v27 }
 0x132   : > { %v761_v51 = vpop.permute.xlu1 %760  ;;  %v757_v52 = vpop.permute.xlu0 %756 }
 0x133   : > { %v1646_v53 = vpack.c.bf16 %v761_v51, %v757_v52  ;;  %v504_v51 = vmul.f32 %v386_v29, %v2280_v27  ;;  %v402_v52 = vrot.slane %v2337_v39, %v2190_v3  ;;  %v507_v13 = vmul.f32 %v398_v20, %v2307_v7 }
 0x134   : > { %v2383_v25 = vcombine.high %v2348_v50, %v2348_v50  ;;  %v422_v28 = vrot.slane %v2348_v50, %v2210_v11 }
 0x135   : > { %1647 = vmatpush3.bf16.msra.mxu1 %v1646_v53  ;;  %v501_v53 = vmul.f32 %v374_v42, %v2319_v17  ;;  %1762 = vtanh.f32 %v504_v51  ;;  %v515_v42 = vmul.f32 %v430_v33, %v2307_v7 }
 0x136   : > { %v702_v54 = vpop.permute.xlu1 %701  ;;  %v698_v55 = vpop.permute.xlu0 %697  ;;  %v450_v39 = vrot.slane %v2383_v25, %v2190_v3  ;;  %v513_v29 = vmul.f32 %v422_v28, %v2319_v17  ;;  %v458_v48 = vrot.slane %v2383_v25, %v2187_v2 }
 0x137   : > { %v1616_v56 = vpack.c.bf16 %v702_v54, %v698_v55  ;;  %v390_v54 = vrot.slane %v329_v24, %v2210_v11  ;;  %1764 = vtanh.f32 %v501_v53  ;;  %v454_v53 = vrot.slane %v2383_v25, %v2210_v11 }
 0x139   : > { %1617 = vmatprep.subr.bf16.mxu0 %v1616_v56  ;;  %v505_v8 = vmul.f32 %v390_v54, %v2319_v17 }
 0x13a   : > { %v836_v57 = vpop.permute.xlu1 %835  ;;  %v832_v58 = vpop.permute.xlu0 %831 }
 0x13b   : > { %v1648_v59 = vpack.c.bf16 %v836_v57, %v832_v58  ;;  %v503_v57 = vmul.f32 %v382_v46, %v2307_v7 }
 0x13d   : > { %1649 = vmatprep.subr.bf16.mxu1 %v1648_v59  ;;  %v506_v59 = vmul.f32 %v394_v49, %v2289_v31  ;;  %1766 = vtanh.f32 %v503_v57  ;;  %v521_v57 = vmul.f32 %v454_v53, %v2319_v17 }
 0x13e   : > { %v635_v62 = vpop.permute.xlu1 %634  ;;  %v631_v63 = vpop.permute.xlu0 %630 }
 0x13f   : > { %v1618_v6 = vpack.c.bf16 %v635_v62, %v631_v63  ;;  %v508_v62 = vmul.f32 %v402_v52, %v2280_v27  ;;  %v418_v63 = vrot.slane %v2348_v50, %v2190_v3  ;;  %1768 = vtanh.f32 %v506_v59 }
 0x140   : > { %v446_v3 = vrot.slane %v2383_v25, %v2193_v4 }
 0x141   : > { %1619 = vmatpush3.bf16.msra.mxu0 %v1618_v6  ;;  %v1747_v6 = vpop.eup %1746  ;;  %1770 = vtanh.f32 %v508_v62  ;;  %v512_v22 = vmul.f32 %v418_v63, %v2280_v27 }
 0x142   : > { %v769_v14 = vpop.permute.xlu1 %768  ;;  %v765_v15 = vpop.permute.xlu0 %764  ;;  %1772 = vtanh.f32 %v505_v8 }
 0x143   : > { %v1650_v19 = vpack.c.bf16 %v769_v14, %v765_v15  ;;  %v414_v14 = vrot.slane %v2348_v50, %v2193_v4  ;;  %v1749_v15 = vpop.eup %1748  ;;  %1774 = vtanh.f32 %v507_v13  ;;  %v519_v4 = vmul.f32 %v446_v3, %v2307_v7 }
 0x144   : > { %v1751_v21 = vpop.eup %1750  ;;  %1776 = vtanh.f32 %v510_v18  ;;  %v2416_v18 = vstv %s258_s24 }
 0x145   : > { %1651 = vmatpush3.bf16.msra.mxu1 %v1650_v19  ;;  %v426_v19 = vrot.slane %v2348_v50, %v2187_v2  ;;  %v1753_v24 = vpop.eup %1752  ;;  %1778 = vtanh.f32 %v512_v22  ;;  %v522_v2 = vmul.f32 %v458_v48, %v2289_v31 }
 0x146   : > { %v710_v30 = vpop.permute.xlu1 %709  ;;  %v706_v32 = vpop.permute.xlu0 %705  ;;  %1780 = vtanh.f32 %v509_v26 }
 0x147   : > { %v1620_v35 = vpack.c.bf16 %v710_v30, %v706_v32  ;;  %v1755_v30 = vpop.eup %1754  ;;  %v511_v32 = vmul.f32 %v414_v14, %v2307_v7 }
 0x148   : > { %v1757_v34 = vpop.eup %1756 }
 0x149   : > { %1621 = vmatprep.subr.bf16.mxu0 %v1620_v35  ;;  %v514_v35 = vmul.f32 %v426_v19, %v2289_v31  ;;  %v1759_v37 = vpop.eup %1758  ;;  %1782 = vtanh.f32 %v511_v32 }
 0x14a   : > { %v844_v43 = vpop.permute.xlu1 %843  ;;  %v840_v44 = vpop.permute.xlu0 %839 }
 0x14b   : > { %v1652_v47 = vpack.c.bf16 %v844_v43, %v840_v44  ;;  %v1761_v40 = vpop.eup %1760  ;;  %v438_v43 = vrot.slane %v2366_v5, %v2210_v11  ;;  %1784 = vtanh.f32 %v514_v35  ;;  %v1985_v5 = vmov 0  }
 0x14c   : > { %v1763_v41 = vpop.eup %1762  ;;  %1786 = vtanh.f32 %v516_v38  ;;  %1732 = vset.pattern.permute.xlu0 %v1985_v5  ;;  %1733 = vset.pattern.permute.xlu1 %v1985_v5 }
 0x14d   : > { %1653 = vmatprep.subr.bf16.mxu1 %v1652_v47  ;;  %v1765_v44 = vpop.eup %1764  ;;  %v520_v47 = vmul.f32 %v450_v39, %v2280_v27  ;;  %1788 = vtanh.f32 %v513_v29  ;;  %v517_v51 = vmul.f32 %v438_v43, %v2319_v17 }
 0x14e   : > { %v643_v55 = vpop.permute.xlu1 %642  ;;  %v639_v56 = vpop.permute.xlu0 %638  ;;  %1790 = vtanh.f32 %v515_v42 }
 0x14f   : > { %v1622_v58 = vpack.c.bf16 %v643_v55, %v639_v56  ;;  %v1767_v46 = vpop.eup %1766  ;;  %1792 = vtanh.f32 %v518_v45 }
 0x150   : > { %v1769_v49 = vpop.eup %1768  ;;  %1794 = vtanh.f32 %v520_v47 }
 0x151   : > { %1623 = vmatpush3.bf16.msra.mxu0 %v1622_v58  ;;  %v1771_v50 = vpop.eup %1770  ;;  %1796 = vtanh.f32 %v517_v51 }
 0x152   : > { %v777_v10 = vpop.permute.xlu1 %776  ;;  %v773_v12 = vpop.permute.xlu0 %772  ;;  %1195 = vmatprep.subr.mxu0 %v2280_v27  ;;  %1798 = vtanh.f32 %v519_v4 }
 0x153   : > { %v1654_v16 = vpack.c.bf16 %v777_v10, %v773_v12  ;;  %v1773_v52 = vpop.eup %1772  ;;  %1800 = vtanh.f32 %v522_v2 }
 0x154   : > { %910 = vmatmul.mubr.f32.vlgmr.msra.gmra.mrb[0].mxu0 %v1745_v61  ;;  %v1775_v54 = vpop.eup %1774  ;;  %1802 = vtanh.f32 %v521_v57 }
 0x155   : > { %1655 = vmatpush3.bf16.msra.mxu1 %v1654_v16  ;;  %914 = vmatprep.mubr.f32.mxu0 %v1747_v6  ;;  %v1777_v27 = vpop.eup %1776 }
 0x156   : > { %1266 = vmatprep.subr.mxu1 %v2289_v31  ;;  %1196 = vmatpush1.msra.mxu0 %v2307_v7  ;;  %v1779_v55 = vpop.eup %1778 }
 0x157   : > { %v1781_v56 = vpop.eup %1780 }
 0x158   : > { %1015 = vmatmul.mubr.f32.vlgmr.msra.gmra.mrb[0].mxu1 %v1749_v15  ;;  %915 = vmatmul.mubr.f32.gmra.mrb[2].mxu0 %v1751_v21  ;;  %v1783_v20 = vpop.eup %1782 }
 0x159   : > { %1019 = vmatprep.mubr.f32.mxu1 %v1753_v24  ;;  %919 = vmatprep.mubr.f32.mxu0 %v1755_v30  ;;  %v1785_v11 = vpop.eup %1784 }
 0x15a   : > { %1267 = vmatpush1.msra.mxu1 %v2319_v17  ;;  %v1787_v7 = vpop.eup %1786 }
 0x15b   : > { %v1789_v58 = vpop.eup %1788 }
 0x15c   : > { %1020 = vmatmul.mubr.f32.gmra.mrb[2].mxu1 %v1757_v34  ;;  %920 = vmatmul.mubr.f32.gmra.mrb[4].mxu0 %v1759_v37  ;;  %v1791_v31 = vpop.eup %1790 }
 0x15d   : > { %1024 = vmatprep.mubr.f32.mxu1 %v1761_v40  ;;  %924 = vmatprep.mubr.f32.mxu0 %v1763_v41  ;;  %v1793_v59 = vpop.eup %1792 }
 0x15e   : > { %v1795_v60 = vpop.eup %1794 }
 0x15f   : > { %v1797_v61 = vpop.eup %1796 }
 0x160   : > { %1025 = vmatmul.mubr.f32.gmra.mrb[4].mxu1 %v1765_v44  ;;  %925 = vmatmul.mubr.f32.gmra.mrb[6].mxu0 %v1767_v46  ;;  %v1799_v17 = vpop.eup %1798 }
 0x161   : > { %1029 = vmatprep.mubr.f32.mxu1 %v1769_v49  ;;  %929 = vmatprep.mubr.f32.mxu0 %v1771_v50  ;;  %v1801_v62 = vpop.eup %1800 }
 0x162   : > { %v1803_v63 = vpop.eup %1802 }
 0x164   : > { %1030 = vmatmul.mubr.f32.gmra.mrb[6].mxu1 %v1773_v52  ;;  %930 = vmatmul.mubr.f32.gmra.mrb[8].mxu0 %v1775_v54 }
 0x165   : > { %1034 = vmatprep.mubr.f32.mxu1 %v1777_v27  ;;  %934 = vmatprep.mubr.f32.mxu0 %v1779_v55 }
 0x168   : > { %1035 = vmatmul.mubr.f32.gmra.mrb[8].mxu1 %v1781_v56  ;;  %935 = vmatmul.mubr.f32.gmra.mrb[10].mxu0 %v1783_v20 }
 0x169   : > { %1039 = vmatprep.mubr.f32.mxu1 %v1785_v11  ;;  %939 = vmatprep.mubr.f32.mxu0 %v1787_v7 }
 0x16c   : > { %1040 = vmatmul.mubr.f32.gmra.mrb[10].mxu1 %v1789_v58  ;;  %940 = vmatmul.mubr.f32.gmra.mrb[12].mxu0 %v1791_v31 }
 0x16d   : > { %1044 = vmatprep.mubr.f32.mxu1 %v1793_v59  ;;  %944 = vmatprep.mubr.f32.mxu0 %v1795_v60 }
 0x170   : > { %1045 = vmatmul.mubr.f32.gmra.mrb[12].mxu1 %v1797_v61  ;;  %945 = vmatmul.mubr.f32.gmra.mrb[14].mxu0 %v1799_v17 }
 0x171   : > { %1049 = vmatprep.mubr.f32.mxu1 %v1801_v62 }
 0x174   : > { %1050 = vmatmul.mubr.f32.gmra.mrb[14].mxu1 %v1803_v63 }
 0x227   : > { %v1512_v6 = vpop.f32.mrb[0].mxu0 }
 0x228   : > { %v1513_v8 = vpop.f32.mrb[1].mxu0 }
 0x229   : > { %v1514_v9 = vadd.f32 %v1513_v8, %v1512_v6 }
 0x22b   : > { %v1568_v10 = vpop.f32.mrb[0].mxu1  ;;  %v1515_v12 = vpop.f32.mrb[2].mxu0 }
 0x22c   : > { %v1569_v13 = vpop.f32.mrb[1].mxu1  ;;  %v1516_v14 = vpop.f32.mrb[3].mxu0 }
 0x22d   : > { %v1570_v15 = vadd.f32 %v1569_v13, %v1568_v10  ;;  %v1517_v16 = vadd.f32 %v1516_v14, %v1515_v12 }
 0x22f   : > { %v1017_v19 = vadd.f32 %v1570_v15, %v1514_v9  ;;  %v1571_v21 = vpop.f32.mrb[2].mxu1  ;;  %v1518_v22 = vpop.f32.mrb[4].mxu0 }
 0x230   : > { %v1572_v23 = vpop.f32.mrb[3].mxu1  ;;  %v1519_v25 = vpop.f32.mrb[5].mxu0 }
 0x231   : > { %v1056_v24 = vadd.f32 %v2416_v18, %v1017_v19  ;;  %v1573_v26 = vadd.f32 %v1572_v23, %v1571_v21  ;;  %v1520_v28 = vadd.f32 %v1519_v25, %v1518_v22 }
 0x233   : > { %v1463_v30 = vmul.f32 -1.442695, %v1056_v24  ;;  %v1022_v32 = vadd.f32 %v1573_v26, %v1517_v16  ;;  %v1574_v33 = vpop.f32.mrb[4].mxu1  ;;  %v1521_v34 = vpop.f32.mrb[6].mxu0 }
 0x234   : > { %v1575_v35 = vpop.f32.mrb[5].mxu1  ;;  %v1522_v36 = vpop.f32.mrb[7].mxu0 }
 0x235   : > { %1804 = vpow2.f32 %v1463_v30  ;;  %v1057_v37 = vadd.f32 %v2416_v18, %v1022_v32  ;;  %v1576_v38 = vadd.f32 %v1575_v35, %v1574_v33  ;;  %v1523_v39 = vadd.f32 %v1522_v36, %v1521_v34 }
 0x237   : > { %v1464_v40 = vmul.f32 -1.442695, %v1057_v37  ;;  %v1027_v29 = vadd.f32 %v1576_v38, %v1520_v28  ;;  %v1577_v41 = vpop.f32.mrb[6].mxu1  ;;  %v1524_v42 = vpop.f32.mrb[8].mxu0 }
 0x238   : > { %v1578_v43 = vpop.f32.mrb[7].mxu1  ;;  %v1525_v44 = vpop.f32.mrb[9].mxu0 }
 0x239   : > { %1806 = vpow2.f32 %v1464_v40  ;;  %v1058_v45 = vadd.f32 %v2416_v18, %v1027_v29  ;;  %v1579_v3 = vadd.f32 %v1578_v43, %v1577_v41  ;;  %v1526_v46 = vadd.f32 %v1525_v44, %v1524_v42 }
 0x23b   : > { %v1465_v47 = vmul.f32 -1.442695, %v1058_v45  ;;  %v1032_v48 = vadd.f32 %v1579_v3, %v1523_v39  ;;  %v1580_v49 = vpop.f32.mrb[8].mxu1  ;;  %v1527_v50 = vpop.f32.mrb[10].mxu0 }
 0x23c   : > { %v1581_v51 = vpop.f32.mrb[9].mxu1  ;;  %v1528_v52 = vpop.f32.mrb[11].mxu0 }
 0x23d   : > { %1808 = vpow2.f32 %v1465_v47  ;;  %v1059_v4 = vadd.f32 %v2416_v18, %v1032_v48  ;;  %v1582_v53 = vadd.f32 %v1581_v51, %v1580_v49  ;;  %v1529_v54 = vadd.f32 %v1528_v52, %v1527_v50 }
 0x23e   : > { %v1145_v49 = vand.u32 127, %v270_v0 }
 0x23f   : > { %v1805_v2 = vpop.eup %1804  ;;  %v1466_v27 = vmul.f32 -1.442695, %v1059_v4  ;;  %v1037_v55 = vadd.f32 %v1582_v53, %v1526_v46  ;;  %v1583_v56 = vpop.f32.mrb[10].mxu1  ;;  %v1986_v46 = vmov 0.0  }
 0x240   : > { %v1530_v57 = vpop.f32.mrb[12].mxu0  ;;  %v1088_v20 = vadd.f32 1.0, %v1805_v2  ;;  %v1584_v11 = vpop.f32.mrb[11].mxu1  ;;  %1259 = vmatprep.mubr.f32.mxu0 %v1986_v46  ;;  %1330 = vmatprep.mubr.f32.mxu1 %v1986_v46  ;;  %v1148_v52 = vsub.s32 %v1145_v49, %v2184_v1 }
 0x241   : > { %v1531_v7 = vpop.f32.mrb[13].mxu0  ;;  %1810 = vpow2.f32 %v1466_v27  ;;  %v1060_v58 = vadd.f32 %v2416_v18, %v1037_v55  ;;  %v1585_v31 = vadd.f32 %v1584_v11, %v1583_v56 }
 0x242   : > { %v1532_v59 = vadd.f32 %v1531_v7, %v1530_v57  ;;  %1812 = vrcp.f32 %v1088_v20 }
 0x243   : > { %v1807_v60 = vpop.eup %1806  ;;  %v1467_v61 = vmul.f32 -1.442695, %v1060_v58  ;;  %v1042_v17 = vadd.f32 %v1585_v31, %v1529_v54  ;;  %v1586_v62 = vpop.f32.mrb[12].mxu1 }
 0x244   : > { %v1533_v63 = vpop.f32.mrb[14].mxu0  ;;  %v1089_v5 = vadd.f32 1.0, %v1807_v60  ;;  %v1587_v6 = vpop.f32.mrb[13].mxu1 }
 0x245   : > { %v1534_v8 = vpop.f32.mrb[15].mxu0  ;;  %1814 = vpow2.f32 %v1467_v61  ;;  %v1061_v9 = vadd.f32 %v2416_v18, %v1042_v17  ;;  %v1588_v10 = vadd.f32 %v1587_v6, %v1586_v62 }
 0x246   : > { %v1535_v12 = vadd.f32 %v1534_v8, %v1533_v63  ;;  %1816 = vrcp.f32 %v1089_v5 }
 0x247   : > { %v1809_v13 = vpop.eup %1808  ;;  %v1468_v14 = vmul.f32 -1.442695, %v1061_v9  ;;  %v1047_v15 = vadd.f32 %v1588_v10, %v1532_v59  ;;  %v1589_v16 = vpop.f32.mrb[14].mxu1 }
 0x248   : > { %v1090_v19 = vadd.f32 1.0, %v1809_v13  ;;  %v1590_v21 = vpop.f32.mrb[15].mxu1 }
 0x249   : > { %1818 = vpow2.f32 %v1468_v14  ;;  %v1062_v22 = vadd.f32 %v2416_v18, %v1047_v15  ;;  %v1591_v23 = vadd.f32 %v1590_v21, %v1589_v16 }
 0x24a   : > { %1820 = vrcp.f32 %v1090_v19 }
 0x24b   : > { %v1811_v25 = vpop.eup %1810  ;;  %v1469_v24 = vmul.f32 -1.442695, %v1062_v22  ;;  %v1052_v26 = vadd.f32 %v1591_v23, %v1535_v12 }
 0x24c   : > { %v1813_v28 = vpop.eup %1812  ;;  %v1091_v30 = vadd.f32 1.0, %v1811_v25 }
 0x24d   : > { %1822 = vpow2.f32 %v1469_v24  ;;  %v1063_v32 = vadd.f32 %v2416_v18, %v1052_v26  ;;  %1121 = vperm.xlu0 %1732, %v1813_v28  }
 0x24e   : > { %1824 = vrcp.f32 %v1091_v30 }
 0x24f   : > { %v1815_v33 = vpop.eup %1814  ;;  %v1470_v34 = vmul.f32 -1.442695, %v1063_v32 }
 0x250   : > { %v1817_v35 = vpop.eup %1816  ;;  %v1092_v36 = vadd.f32 1.0, %v1815_v33 }
 0x251   : > { %1826 = vpow2.f32 %v1470_v34  ;;  %1124 = vperm.xlu1 %1733, %v1817_v35  }
 0x252   : > { %1828 = vrcp.f32 %v1092_v36 }
 0x253   : > { %v1819_v37 = vpop.eup %1818 }
 0x254   : > { %v1821_v38 = vpop.eup %1820  ;;  %v1093_v39 = vadd.f32 1.0, %v1819_v37 }
 0x255   : > { %1127 = vperm.xlu1 %1733, %v1821_v38  }
 0x256   : > { %1830 = vrcp.f32 %v1093_v39 }
 0x257   : > { %v1823_v40 = vpop.eup %1822 }
 0x258   : > { %v1825_v29 = vpop.eup %1824  ;;  %v1094_v41 = vadd.f32 1.0, %v1823_v40 }
 0x259   : > { %1130 = vperm.xlu0 %1732, %v1825_v29  }
 0x25a   : > { %1832 = vrcp.f32 %v1094_v41 }
 0x25b   : > { %v1827_v18 = vpop.eup %1826 }
 0x25c   : > { %v1829_v42 = vpop.eup %1828  ;;  %v1095_v43 = vadd.f32 1.0, %v1827_v18 }
 0x25d   : > { %1133 = vperm.xlu1 %1733, %v1829_v42  }
 0x25e   : > { %1834 = vrcp.f32 %v1095_v43 }
 0x260   : > { %v1831_v44 = vpop.eup %1830 }
 0x261   : > { %1136 = vperm.xlu0 %1732, %v1831_v44  }
 0x264   : > { %v1833_v45 = vpop.eup %1832 }
 0x265   : > { %1139 = vperm.xlu1 %1733, %v1833_v45  }
 0x268   : > { %v1835_v3 = vpop.eup %1834 }
 0x269   : > { %1142 = vperm.xlu0 %1732, %v1835_v3  }
 0x2cc   : > { %v1122_v48 = vpop.permute.xlu0 %1121 }
 0x2cd   : > { %v1149_v27 = vrot.slane %v1122_v48, %v1148_v52 }
 0x2d0   : > { %v1125_v47 = vpop.permute.xlu1 %1124 }
 0x2d1   : > { %v1153_v53 = vrot.slane %v1125_v47, %v1148_v52 }
 0x2d3   : > { %v1179_v20 = vsel %vm1178_vm0, %v1153_v53, %v1149_v27 }
 0x2d4   : > { %v1128_v50 = vpop.permute.xlu1 %1127 }
 0x2d5   : > { %v1157_v54 = vrot.slane %v1128_v50, %v1148_v52 }
 0x2d7   : > { %v1181_v0 = vsel %vm1180_vm1, %v1157_v54, %v1179_v20 }
 0x2d8   : > { %v1131_v51 = vpop.permute.xlu0 %1130 }
 0x2d9   : > { %v1161_v55 = vrot.slane %v1131_v51, %v1148_v52 }
 0x2db   : > { %v1183_v1 = vsel %vm1182_vm2, %v1161_v55, %v1181_v0 }
 0x2dc   : > { %v1134_v4 = vpop.permute.xlu1 %1133 }
 0x2dd   : > { %v1165_v56 = vrot.slane %v1134_v4, %v1148_v52 }
 0x2df   : > { %v1185_v58 = vsel %vm1184_vm3, %v1165_v56, %v1183_v1 }
 0x2e0   : > { %v1137_v2 = vpop.permute.xlu0 %1136 }
 0x2e1   : > { %v1169_v11 = vrot.slane %v1137_v2, %v1148_v52 }
 0x2e3   : > { %v1187_v59 = vsel %vm1186_vm4, %v1169_v11, %v1185_v58 }
 0x2e4   : > { %v1140_v57 = vpop.permute.xlu1 %1139 }
 0x2e5   : > { %v1173_v7 = vrot.slane %v1140_v57, %v1148_v52 }
 0x2e7   : > { %v1189_v61 = vsel %vm1188_vm5, %v1173_v7, %v1187_v59 }
 0x2e8   : > { %v1143_v31 = vpop.permute.xlu0 %1142 }
 0x2e9   : > { %v1177_v60 = vrot.slane %v1143_v31, %v1148_v52 }
 0x2eb   : > { %v1191_v17 = vsel %vm1190_vm6, %v1177_v60, %v1189_v61 }
 0x2ec   : > { %1471 = vmatmul.mubr.msk.f32.vlgmr.msra.gmra.mrb[16].mxu0 %vm1192_vm7, %v1191_v17  ;;  %1472 = vmatmul.mubr.msk.f32.vlgmr.msra.gmra.mrb[16].mxu1 %vm1192_vm7, %v1191_v17 }
 0x3bf   : > { %v1261_v62 = vpop.f32.mrb[16].mxu0  ;;  %v1332_v63 = vpop.f32.mrb[16].mxu1 }
 0x3c0   : > { %1337 = vst [vmem:[%s249_s13] sm:$0xff] %v1261_v62  ;;  %1339 = vst [vmem:[%s249_s13 + $0x10] sm:$0xff] %v1332_v63  ;;  %v1263_v5 = vpop.f32.mrb[17].mxu0  ;;  %v1334_v6 = vpop.f32.mrb[17].mxu1 }
 0x3c1   : > { %1338 = vst [vmem:[%s249_s13 + $0x8] sm:$0xff] %v1263_v5  ;;  %1340 = vst [vmem:[%s249_s13 + $0x18] sm:$0xff] %v1334_v6 }
 0x3c2   : > { %1907 = shalt.err (!%p1904_p5)
}
 0x3c3   : > { %s1908_s16 = scalar_lea.hbm %s2436_s8, 512  ;;  %s1912_s29 = scalar_lea.hbm %s2487_s4, 1024 }
 0x3c4   : > { %p1909_p10 = scmp.ne.s32.totalorder %s2436_s8, %s1908_s16  ;;  %p1913_p7 = scmp.lt.u32.totalorder %s2436_s8, %s2487_s4 }
 0x3c5   : > { %p1914_p3 = scmp.lt.u32.totalorder %s1912_s29, %s1908_s16  ;;  %p1916_p2 = scmp.lt.u32.totalorder %s1908_s16, %s2436_s8 }
 0x3c6   : > { %p1910_p4 = pnand %p1909_p10, %p2117_p13 }
 0x3c7   : > { %p1915_p11 = por %p1914_p3, %p1913_p7 }
 0x3c8   : > { %p1911_p1 = pneg %p1910_p4 }
 0x3c9   : > { %p1917_p6 = por %p1916_p2, %p1915_p11 }
 0x3cb   : > { %p1918_p8 = pnand %p1917_p6, %p1911_p1 }
 0x3cd   : > { %1921 = shalt.err (!%p1918_p8)
}
 0x3ce   : > { %1662 = dma.vmem_to_hbm [thread:$0]  (%p2117_p13), %s2431_s14, 512, %s2436_s8, %s1342_s9  }
 0x3cf PF: > { %s1370_s24 = sand.u32 1, %s1960_s17   ;;  %p2506_p9 = scmp.ne.s32.totalorder %s2495_s27, 0 }
 0x3d0   : > { %p2507_p12 = scmp.ge.s32.totalorder %s1980_s22, 2  ;;  %s1371_s13 = scalar_lea.sflag [#allocation5], %s1370_s24 }
 0x3d2   : > { %p1673_p0 = pnand %p2507_p12, %p2506_p9 }
 0x3d4   : > { %1955 = dma.done.wait (!%p1673_p0), %s1371_s13, 512  }
 0x3d5   : > { %1957 = vsyncadd (!%p1673_p0), %s1371_s13, 4294966784  ;;  %s22_s22 = sadd.s32 1, %s1980_s22   ;;  %s2508_s17 = smov %s1964_s18 }
 0x3d6   : > { %p19_p5 = scmp.ge.s32.totalorder %s22_s22, 4   ;;  %s2509_s18 = smov %s1968_s19 }
 0x3d7   : > { %s2510_s19 = smov %s2125_s10  ;;  %s2511_s20 = smov %s1976_s21 }
 0x3d8   : > { %s2512_s21 = smov %s2514_s6  ;;  %21 = sbr.rel (!%p19_p5) target bundleno = 9 (0x9), region = 86 }
 0x3df   :  { %1376 = vsyncpa [#allocation4], 1 }
 0x3e0   :  { %1378 = vsyncpa [#allocation4 + $0x1], 1 }
 0x3e1   :  { %1379 = vsyncpa [#allocation7], 1 }
 0x3e2   :  { %1380 = vsyncpa [#allocation5], 1 }
 0x3e3   :  { %1382 = vsyncpa [#allocation5 + $0x1], 1 }

</bundles_post_ra>
